<compile_context>
chip_gen: v6e
topology: v6e:2x2x1
jax: 0.10.0
libtpu: 0.0.40
codegen_flags: <defaults>
</compile_context>

<pallas_src>
import functools
import math

import jax
import jax.numpy as jnp
from jax.experimental import pallas as pl
from jax.experimental.pallas import tpu as pltpu

LN_EPS = 1e-5            # nn.LayerNorm default eps
ROW_TILE_TARGET = 512    # measured sweet spot (~85% HBM roofline) for row tiles
MIB = 1 << 20


# ----------------------------------------------------------------------------
# helpers
# ----------------------------------------------------------------------------
def _pick_tile(n, target=ROW_TILE_TARGET):
    """Row tile: divisor of n, multiple of 8, <= target.

    When n already fits in one tile we still split it in two (if legal) so the grid has
    >= 2 steps and both v7x TensorCores get work."""
    if n <= target:
        half = n // 2
        if n % 2 == 0 and half >= 8 and half % 8 == 0:
            return half
        return n
    for t in range(target, 7, -1):
        if n % t == 0 and t % 8 == 0:
            return t
    # TODO(synk): pad rows + masked tail store instead of one giant block for awkward n.
    return n


def _pick_hidden_tile(dh, d):
    """Dh tile for the MLP: keep the (D,tdh)+(tdh,D) bf16 weight tiles (double buffered
    along the Dh axis) around <= 16 MiB so W1/W2 never need to be fully resident."""
    budget = 16 * MIB
    target = max(128, budget // (8 * d))
    if dh <= target:
        return dh
    t = (min(dh, target) // 128) * 128
    while t >= 128:
        if dh % t == 0:
            return t
        t -= 128
    return dh


def _vmem_cap_bytes():
    try:
        return int(pltpu.get_tpu_info().vmem_capacity_bytes)
    except Exception:
        return 128 * MIB


def _compiler_params(sem, est_bytes):
    """dimension_semantics + an explicit scoped-VMEM limit sized from the actual
    tile/weight footprint (default scoped limit is only 16/32 MiB)."""
    cap = _vmem_cap_bytes()
    limit = max(2 * int(est_bytes) + 2 * MIB, 32 * MIB)
    limit = int(min(limit, max(int(0.9 * cap), 32 * MIB)))
    return pltpu.CompilerParams(dimension_semantics=sem, vmem_limit_bytes=limit)


# --- single-buffered specs for grid-invariant operands (weights / biases / LN params) ---
_BUFFERED_OK = None


def _probe_kernel(x_ref, o_ref):
    o_ref[...] = x_ref[...]


def _buffered_supported():
    """pl.Buffered(1) halves resident-weight VMEM (no pointless double buffering of
    grid-invariant blocks).  Probe once and silently fall back if this JAX / Mosaic
    version rejects pipeline_mode on pallas_call BlockSpecs."""
    global _BUFFERED_OK
    if _BUFFERED_OK is not None:
        return _BUFFERED_OK
    try:
        spec = pl.BlockSpec((8, 128), lambda i: (0, 0), pipeline_mode=pl.Buffered(1))
        fn = pl.pallas_call(
            _probe_kernel,
            out_shape=jax.ShapeDtypeStruct((8, 128), jnp.float32),
            grid=(2,),
            in_specs=[spec],
            out_specs=pl.BlockSpec((8, 128), lambda i: (0, 0)),
        )
        jax.block_until_ready(fn(jnp.zeros((8, 128), jnp.float32)))
        _BUFFERED_OK = True
    except Exception:
        _BUFFERED_OK = False
    return _BUFFERED_OK


def _const_spec(shape):
    """BlockSpec for a grid-invariant operand (weights / biases / LN params)."""
    index_map = lambda *_: (0,) * len(shape)
    if _buffered_supported():
        return pl.BlockSpec(shape, index_map, pipeline_mode=pl.Buffered(1))
    return pl.BlockSpec(shape, index_map)


# --- in-kernel math (f32; v5e has no bf16 VPU/EUP) ---
def _layer_norm(x, g, b, eps=LN_EPS):
    mu = jnp.mean(x, axis=-1, keepdims=True)
    var = jnp.mean((x - mu) ** 2, axis=-1, keepdims=True)
    return (x - mu) * jax.lax.rsqrt(var + eps) * g + b


def _erf_poly(x):
    # Abramowitz & Stegun 7.1.26 (|err| < 1.5e-7): exact-GELU numerics using only
    # exp / mul / add / reciprocal, all of which lower on v5e / v6e / v7x.
    p = 0.3275911
    a1, a2, a3, a4, a5 = 0.254829592, -0.284496736, 1.421413741, -1.453152027, 1.061405429
    ax = jnp.abs(x)
    t = pl.reciprocal(1.0 + p * ax, approx=True)           # EUP slot, frees the VPU
    poly = ((((a5 * t + a4) * t + a3) * t + a2) * t + a1) * t
    y = 1.0 - poly * jnp.exp(-ax * ax)
    return jnp.where(x < 0.0, -y, y)


def _gelu_exact(x):
    return 0.5 * x * (1.0 + _erf_poly(x * (1.0 / math.sqrt(2.0))))


# ----------------------------------------------------------------------------
# kernel 1: fused K|V projection of the encoder memory (row-tiled, weight resident)
# ----------------------------------------------------------------------------
def _kv_proj_kernel(x_ref, wkv_ref, bkv_ref, kv_ref):
    x = x_ref[...].astype(jnp.bfloat16)                     # cast in-kernel (no HBM copy)
    kv = jnp.dot(x, wkv_ref[...], preferred_element_type=jnp.float32) + bkv_ref[...]
    kv_ref[...] = kv.astype(kv_ref.dtype)                   # lane-dense 2D-wide store


def kv_project(emb2d, wkv, bkv_row):
    rows, d = emb2d.shape
    d2 = wkv.shape[1]
    tr = _pick_tile(rows)
    est = tr * d * emb2d.dtype.itemsize + d * d2 * 2 + tr * d2 * 2 + d2 * 4
    return pl.pallas_call(
        _kv_proj_kernel,
        out_shape=jax.ShapeDtypeStruct((rows, d2), jnp.bfloat16),
        grid=(rows // tr,),
        in_specs=[
            pl.BlockSpec((tr, d), lambda i: (i, 0)),        # activations: tiled + pipelined
            _const_spec((d, d2)),                           # fused Wk|Wv: resident
            _const_spec((1, d2)),
        ],
        out_specs=pl.BlockSpec((tr, d2), lambda i: (i, 0)),
        compiler_params=_compiler_params(("parallel",), est),
    )(emb2d, wkv, bkv_row)


# ----------------------------------------------------------------------------
# kernel 2: LayerNorm_2(tgt) fused with the (pre-scaled) Q projection
# ----------------------------------------------------------------------------
def _ln_q_kernel(x_ref, g_ref, b_ref, wq_ref, bq_ref, q_ref):
    x = x_ref[...].astype(jnp.float32)
    a = _layer_norm(x, g_ref[...], b_ref[...])
    q = jnp.dot(a.astype(jnp.bfloat16), wq_ref[...],
                preferred_element_type=jnp.float32) + bq_ref[...]
    q_ref[...] = q.astype(q_ref.dtype)


def ln_q_project(tgt2d, ln_g, ln_b, wq, bq_row):
    rows, d = tgt2d.shape
    tr = _pick_tile(rows)
    est = tr * d * tgt2d.dtype.itemsize + d * d * 2 + tr * d * 2 + 4 * d * 4
    return pl.pallas_call(
        _ln_q_kernel,
        out_shape=jax.ShapeDtypeStruct((rows, d), jnp.bfloat16),
        grid=(rows // tr,),
        in_specs=[
            pl.BlockSpec((tr, d), lambda i: (i, 0)),
            _const_spec((1, d)),
            _const_spec((1, d)),
            _const_spec((d, d)),
            _const_spec((1, d)),
        ],
        out_specs=pl.BlockSpec((tr, d), lambda i: (i, 0)),
        compiler_params=_compiler_params(("parallel",), est),
    )(tgt2d,
      ln_g.reshape(1, d).astype(jnp.float32), ln_b.reshape(1, d).astype(jnp.float32),
      wq, bq_row)


# ----------------------------------------------------------------------------
# kernel 3: multi-head cross attention, flash-style (Nk streamed, online softmax).
#           Head split/merge is done with static lane slices inside the kernel, so the
#           HBM-side layouts (q: D-wide, kv: 2D-wide, ctx: D-wide) are all lane-dense and
#           no separate transpose passes through HBM are needed.
# ----------------------------------------------------------------------------
def _attn_kernel(q_ref, kv_ref, o_ref, m_sc, l_sc, acc_sc, *, num_heads, head_dim):
    kv_step = pl.program_id(2)
    d = num_heads * head_dim

    @pl.when(kv_step == 0)
    def _():
        m_sc[...] = jnp.full(m_sc.shape, -1e30, jnp.float32)
        l_sc[...] = jnp.zeros(l_sc.shape, jnp.float32)
        acc_sc[...] = jnp.zeros(acc_sc.shape, jnp.float32)

    q2 = q_ref[0]                      # (tq, D)  bf16 (temperature folded into Wq)
    kvb = kv_ref[0]                    # (tk, 2D) bf16, [K | V] along lanes

    for h in range(num_heads):         # static unroll; same MXU work as a batched dot
        lo = h * head_dim
        q_h = q2[:, lo:lo + head_dim]                       # (tq, hd)
        k_h = kvb[:, lo:lo + head_dim]                      # (tk, hd)
        v_h = kvb[:, d + lo:d + lo + head_dim]              # (tk, hd)

        s = jnp.dot(q_h, k_h.T, preferred_element_type=jnp.float32)   # (tq, tk) f32
        m_prev = m_sc[h]
        m_new = jnp.maximum(m_prev, jnp.max(s, axis=-1, keepdims=True))
        alpha = jnp.exp(m_prev - m_new)
        p = jnp.exp(s - m_new)
        l_sc[h] = alpha * l_sc[h] + jnp.sum(p, axis=-1, keepdims=True)
        acc_sc[h] = alpha * acc_sc[h] + jnp.dot(
            p.astype(v_h.dtype), v_h, preferred_element_type=jnp.float32)
        m_sc[h] = m_new

    @pl.when(kv_step == pl.num_programs(2) - 1)
    def _():
        parts = []
        for h in range(num_heads):
            inv_l = pl.reciprocal(l_sc[h], approx=True)     # EUP slot, ~free
            parts.append(acc_sc[h] * inv_l)                 # (tq, hd) f32
        ctx = jnp.concatenate(parts, axis=-1)               # (tq, D)  head merge in VMEM
        o_ref[0] = ctx.astype(o_ref.dtype)                  # lane-dense D-wide store


def attention(q, kv, *, num_heads):
    b, nq, d = q.shape
    nk = kv.shape[1]
    hd = d // num_heads

    # Stream K/V along an "arbitrary" Nk axis; bound tq by a VMEM budget for the live
    # per-head (tq, tk) f32 score block.
    tk = _pick_tile(nk, 512)
    tq_budget = max(8, ((6 * MIB) // max(1, tk * 4 * 3)) // 8 * 8)
    tq = _pick_tile(nq, min(256, tq_budget))

    est = (tq * d * 2 + tk * 2 * d * 2 + tq * d * 2
           + num_heads * tq * (hd + 2) * 4
           + 3 * tq * tk * 4)
    kernel = functools.partial(_attn_kernel, num_heads=num_heads, head_dim=hd)
    return pl.pallas_call(
        kernel,
        out_shape=jax.ShapeDtypeStruct((b, nq, d), jnp.bfloat16),
        grid=(b, nq // tq, nk // tk),
        in_specs=[
            pl.BlockSpec((1, tq, d), lambda bi, qi, ki: (bi, qi, 0)),
            pl.BlockSpec((1, tk, 2 * d), lambda bi, qi, ki: (bi, ki, 0)),
        ],
        out_specs=pl.BlockSpec((1, tq, d), lambda bi, qi, ki: (bi, qi, 0)),
        scratch_shapes=[
            pltpu.VMEM((num_heads, tq, 1), jnp.float32),    # running max
            pltpu.VMEM((num_heads, tq, 1), jnp.float32),    # running denom
            pltpu.VMEM((num_heads, tq, hd), jnp.float32),   # running ctx accumulator
        ],
        compiler_params=_compiler_params(("parallel", "parallel", "arbitrary"), est),
    )(q, kv)


# ----------------------------------------------------------------------------
# kernel 4: attention output proj + residual + LayerNorm_2 + MLP(GELU) + residual,
#           with W1/W2 streamed over an "arbitrary" Dh axis (f32 accumulator scratch).
# ----------------------------------------------------------------------------
def _proj_mlp_kernel(tgt_ref, ctx_ref, wo_ref, bo_ref, g_ref, be_ref,
                     w1_ref, b1_ref, w2_ref, b2_ref, o_ref,
                     t1_sc, hn_sc, acc_sc):
    j = pl.program_id(1)

    @pl.when(j == 0)
    def _():
        x = tgt_ref[...].astype(jnp.float32)                # residual stream (orig dtype in HBM)
        attn = jnp.dot(ctx_ref[...], wo_ref[...],
                       preferred_element_type=jnp.float32) + bo_ref[...]
        t1 = x + attn                                       # tgt + enc_dec_attn(...)
        t1_sc[...] = t1
        hn_sc[...] = _layer_norm(t1, g_ref[...], be_ref[...]).astype(jnp.bfloat16)
        acc_sc[...] = jnp.zeros(acc_sc.shape, jnp.float32)

    h = jnp.dot(hn_sc[...], w1_ref[...],
                preferred_element_type=jnp.float32) + b1_ref[...]
    h = _gelu_exact(h)                                      # exact (erf) GELU, f32
    acc_sc[...] += jnp.dot(h.astype(jnp.bfloat16), w2_ref[...],
                           preferred_element_type=jnp.float32)

    @pl.when(j == pl.num_programs(1) - 1)
    def _():
        o_ref[...] = (t1_sc[...] + acc_sc[...] + b2_ref[...]).astype(o_ref.dtype)


def proj_mlp(tgt2d, ctx2d, wo, bo, ln_g, ln_b, w1, b1, w2, b2, out_dtype):
    rows, d = tgt2d.shape
    dh = w1.shape[1]
    tr = _pick_tile(rows)
    tdh = _pick_hidden_tile(dh, d)
    est = (tr * d * (tgt2d.dtype.itemsize + 2) + d * d * 2
           + 2 * (d * tdh * 2 + tdh * d * 2)
           + tr * d * 10 + tr * tdh * 8
           + tr * d * jnp.dtype(out_dtype).itemsize)
    return pl.pallas_call(
        _proj_mlp_kernel,
        out_shape=jax.ShapeDtypeStruct((rows, d), out_dtype),
        grid=(rows // tr, dh // tdh),
        in_specs=[
            pl.BlockSpec((tr, d), lambda i, j: (i, 0)),     # residual stream tile
            pl.BlockSpec((tr, d), lambda i, j: (i, 0)),     # attention ctx tile
            _const_spec((d, d)),                            # Wo (resident, single-buffered)
            _const_spec((1, d)),                            # bo
            _const_spec((1, d)),                            # ln2 gamma
            _const_spec((1, d)),                            # ln2 beta
            pl.BlockSpec((d, tdh), lambda i, j: (0, j)),    # W1 tile (streams over Dh)
            pl.BlockSpec((1, tdh), lambda i, j: (0, j)),    # b1 tile
            pl.BlockSpec((tdh, d), lambda i, j: (j, 0)),    # W2 tile (streams over Dh)
            _const_spec((1, d)),                            # b2
        ],
        out_specs=pl.BlockSpec((tr, d), lambda i, j: (i, 0)),
        scratch_shapes=[
            pltpu.VMEM((tr, d), jnp.float32),               # t1 (post-attention residual)
            pltpu.VMEM((tr, d), jnp.bfloat16),              # norm2(t1) in matmul precision
            pltpu.VMEM((tr, d), jnp.float32),               # MLP accumulator over Dh tiles
        ],
        compiler_params=_compiler_params(("parallel", "arbitrary"), est),
    )(tgt2d, ctx2d,
      wo.astype(jnp.bfloat16), bo.reshape(1, d).astype(jnp.float32),
      ln_g.reshape(1, d).astype(jnp.float32), ln_b.reshape(1, d).astype(jnp.float32),
      w1.astype(jnp.bfloat16), b1.reshape(1, dh).astype(jnp.float32),
      w2.astype(jnp.bfloat16), b2.reshape(1, d).astype(jnp.float32))


# ----------------------------------------------------------------------------
# forward orchestration
# ----------------------------------------------------------------------------
def decoder_block_forward(params, tgt, emb_motion, *, num_heads):
    """Eval-mode DecoderBlock.forward."""
    b, nq, d = tgt.shape
    nk = emb_motion.shape[1]
    hd = d // num_heads
    out_dtype = tgt.dtype
    scale = 1.0 / math.sqrt(hd)

    # 1/temperature folded into the Q projection (free at the XLA level).
    wq = (params["wq"] * scale).astype(jnp.bfloat16)
    bq = (params["bq"] * scale).reshape(1, d).astype(jnp.float32)

    # Fused K|V projection weight -> one (tr,D)x(D,2D) matmul, one resident weight buffer.
    wkv = jnp.concatenate([params["wk"], params["wv"]], axis=1).astype(jnp.bfloat16)
    bkv = (jnp.concatenate([params["bk"], params["bv"]], axis=0)
           .reshape(1, 2 * d).astype(jnp.float32))

    # Residual stream / memory stay in their original dtype on HBM (cast in-kernel).
    tgt2d = tgt.reshape(b * nq, d)
    emb2d = emb_motion.reshape(b * nk, d)

    kv2d = kv_project(emb2d, wkv, bkv)                                   # (B*Nk, 2D) bf16
    q2d = ln_q_project(tgt2d, params["ln2_g"], params["ln2_b"], wq, bq)  # (B*Nq, D)  bf16

    # These reshapes are metadata-only; head split/merge happens inside the attention
    # kernel, so no HBM passes are spent on layout plumbing.
    ctx = attention(q2d.reshape(b, nq, d), kv2d.reshape(b, nk, 2 * d), num_heads=num_heads)
    ctx2d = ctx.reshape(b * nq, d)

    out2d = proj_mlp(tgt2d, ctx2d, params["wo"], params["bo"],
                     params["ln2_g"], params["ln2_b"],
                     params["w1"], params["b1"], params["w2"], params["b2"], out_dtype)
    return out2d.reshape(b, nq, d)


# ----------------------------------------------------------------------------
# params + pure-JAX reference (for correctness check)
# ----------------------------------------------------------------------------
def init_params(key, dim, mlp_ratio=4.0):
    dh = int(dim * mlp_ratio)
    ks = jax.random.split(key, 6)

    def dense(k, din, dout):
        kw, kb = jax.random.split(k)
        # weights stored [in, out] so y = x @ W + b == PyTorch x @ W_pt.T + b
        return (0.02 * jax.random.normal(kw, (din, dout), jnp.float32),
                0.02 * jax.random.normal(kb, (dout,), jnp.float32))

    p = {}
    p["wq"], p["bq"] = dense(ks[0], dim, dim)
    p["wk"], p["bk"] = dense(ks[1], dim, dim)
    p["wv"], p["bv"] = dense(ks[2], dim, dim)
    p["wo"], p["bo"] = dense(ks[3], dim, dim)
    p["w1"], p["b1"] = dense(ks[4], dim, dh)
    p["w2"], p["b2"] = dense(ks[5], dh, dim)
    p["ln2_g"] = jnp.ones((dim,), jnp.float32)
    p["ln2_b"] = jnp.zeros((dim,), jnp.float32)
    return p


def decoder_block_ref(params, tgt, emb_motion, *, num_heads):
    def ln(x, g, b, eps=LN_EPS):
        mu = x.mean(-1, keepdims=True)
        var = ((x - mu) ** 2).mean(-1, keepdims=True)
        return (x - mu) / jnp.sqrt(var + eps) * g + b

    B, Nq, D = tgt.shape
    Nk = emb_motion.shape[1]
    hd = D // num_heads

    a = ln(tgt, params["ln2_g"], params["ln2_b"])
    q = a @ params["wq"] + params["bq"]
    k = emb_motion @ params["wk"] + params["bk"]
    v = emb_motion @ params["wv"] + params["bv"]

    qh = q.reshape(B, Nq, num_heads, hd).transpose(0, 2, 1, 3)
    kh = k.reshape(B, Nk, num_heads, hd).transpose(0, 2, 1, 3)
    vh = v.reshape(B, Nk, num_heads, hd).transpose(0, 2, 1, 3)

    s = (qh / math.sqrt(hd)) @ kh.transpose(0, 1, 3, 2)
    p = jax.nn.softmax(s, axis=-1)
    ctx = (p @ vh).transpose(0, 2, 1, 3).reshape(B, Nq, D)

    t1 = tgt + (ctx @ params["wo"] + params["bo"])
    h = ln(t1, params["ln2_g"], params["ln2_b"])
    h = jax.nn.gelu(h @ params["w1"] + params["b1"], approximate=False)
    return t1 + (h @ params["w2"] + params["b2"])


if __name__ == "__main__":
    # small shapes consistent with the module; production dims should be 128-multiples
    # for fully lane-dense loads/stores.
    B, Nq, Nk = 2, 8, 8
    dim, num_heads = 32, 4

    key = jax.random.PRNGKey(0)
    pkey, tkey, mkey = jax.random.split(key, 3)
    params = init_params(pkey, dim)
    tgt = jax.random.normal(tkey, (B, Nq, dim), jnp.float32)
    emb_motion = jax.random.normal(mkey, (B, Nk, dim), jnp.float32)

    out = decoder_block_forward(params, tgt, emb_motion, num_heads=num_heads)
    out = jax.block_until_ready(out)
    assert out.shape == (B, Nq, dim), out.shape
    assert out.dtype == tgt.dtype, out.dtype

    ref = decoder_block_ref(params, tgt, emb_motion, num_heads=num_heads)
    err = float(jnp.max(jnp.abs(out - ref.astype(out.dtype))))
    assert err < 3e-2, f"max abs error vs reference = {err}"
    print("KERNEL_OK")
</pallas_src>

<mosaic_0001>
module attributes {stable_mosaic.version = 11 : i64} {
  func.func @_probe_kernel(%arg0: i32, %arg1: memref<8x128xf32, #tpu.memory_space<vmem>>, %arg2: memref<8x128xf32, #tpu.memory_space<vmem>>) attributes {dimension_semantics = [#tpu.dimension_semantics<arbitrary>], iteration_bounds = array<i64: 2>, scalar_prefetch = 0 : i64, scratch_operands = 0 : i64, tpu.core_type = #tpu.core_type<tc>, window_params = [{pipeline_mode = #tpu.pipeline_mode<synchronous>, transform_indices = @transform_0, window_bounds = array<i64: 8, 128>}, {pipeline_mode = #tpu.pipeline_mode<synchronous>, transform_indices = @transform_1, window_bounds = array<i64: 8, 128>}]} {
    %c0 = arith.constant 0 : index
    %c0_0 = arith.constant 0 : index
    %0 = vector.load %arg1[%c0, %c0_0] : memref<8x128xf32, #tpu.memory_space<vmem>>, vector<8x128xf32>
    %c0_1 = arith.constant 0 : index
    %c0_2 = arith.constant 0 : index
    %1 = vector.load %arg2[%c0_1, %c0_2] : memref<8x128xf32, #tpu.memory_space<vmem>>, vector<8x128xf32>
    tpu.vector_store %arg2[%c0_1, %c0_2], %0 {strides = array<i32>} : memref<8x128xf32, #tpu.memory_space<vmem>>, vector<8x128xf32>,
    return
  }
  func.func @transform_0(%arg0: i32) -> (i32, i32) {
    %c0_i32 = arith.constant 0 : i32
    %c0_i32_0 = arith.constant 0 : i32
    %c0_i32_1 = arith.constant 0 : i32
    return %c0_i32, %c0_i32_0 : i32, i32
  }
  func.func @transform_1(%arg0: i32) -> (i32, i32) {
    %c0_i32 = arith.constant 0 : i32
    %c0_i32_0 = arith.constant 0 : i32
    %c0_i32_1 = arith.constant 0 : i32
    return %c0_i32, %c0_i32_0 : i32, i32
  }
}

module attributes {stable_mosaic.version = 11 : i64} {
  func.func @_kv_proj_kernel(%arg0: i32, %arg1: memref<8x32xf32, #tpu.memory_space<vmem>>, %arg2: memref<32x64xbf16, #tpu.memory_space<vmem>>, %arg3: memref<1x64xf32, #tpu.memory_space<vmem>>, %arg4: memref<8x64xbf16, #tpu.memory_space<vmem>>) attributes {dimension_semantics = [#tpu.dimension_semantics<parallel>], iteration_bounds = array<i64: 2>, scalar_prefetch = 0 : i64, scratch_operands = 0 : i64, tpu.core_type = #tpu.core_type<tc>, window_params = [{transform_indices = @transform_0, window_bounds = array<i64: 8, 32>}, {pipeline_mode = #tpu.pipeline_mode<synchronous>, transform_indices = @transform_1, window_bounds = array<i64: 32, 64>}, {pipeline_mode = #tpu.pipeline_mode<synchronous>, transform_indices = @transform_2, window_bounds = array<i64: 1, 64>}, {transform_indices = @transform_3, window_bounds = array<i64: 8, 64>}]} {
    %c0 = arith.constant 0 : index
    %c0_0 = arith.constant 0 : index
    %0 = vector.load %arg1[%c0, %c0_0] : memref<8x32xf32, #tpu.memory_space<vmem>>, vector<8x32xf32>
    %1 = arith.truncf %0 : vector<8x32xf32> to vector<8x32xbf16>
    %c0_1 = arith.constant 0 : index
    %c0_2 = arith.constant 0 : index
    %2 = vector.load %arg2[%c0_1, %c0_2] : memref<32x64xbf16, #tpu.memory_space<vmem>>, vector<32x64xbf16>
    %cst = arith.constant dense<0.000000e+00> : vector<8x64xf32>
    %3 = tpu.matmul %1, %2, %cst {dimension_numbers = #tpu.dot_dimension_numbers<[1], [0], [0], [1], [0, 0, 1, 1], [], []>} : vector<8x32xbf16>, vector<32x64xbf16>, vector<8x64xf32> -> vector<8x64xf32>
    %c0_3 = arith.constant 0 : index
    %c0_4 = arith.constant 0 : index
    %4 = vector.load %arg3[%c0_3, %c0_4] : memref<1x64xf32, #tpu.memory_space<vmem>>, vector<1x64xf32>
    %5 = vector.broadcast %4 : vector<1x64xf32> to vector<8x64xf32>
    %6 = arith.addf %3, %5 : vector<8x64xf32>
    %7 = arith.truncf %6 : vector<8x64xf32> to vector<8x64xbf16>
    %c0_5 = arith.constant 0 : index
    %c0_6 = arith.constant 0 : index
    %8 = vector.load %arg4[%c0_5, %c0_6] : memref<8x64xbf16, #tpu.memory_space<vmem>>, vector<8x64xbf16>
    tpu.vector_store %arg4[%c0_5, %c0_6], %7 {strides = array<i32>} : memref<8x64xbf16, #tpu.memory_space<vmem>>, vector<8x64xbf16>,
    return
  }
  func.func @transform_0(%arg0: i32) -> (i32, i32) {
    %c0_i32 = arith.constant 0 : i32
    %c0_i32_0 = arith.constant 0 : i32
    return %arg0, %c0_i32 : i32, i32
  }
  func.func @transform_1(%arg0: i32) -> (i32, i32) {
    %c0_i32 = arith.constant 0 : i32
    %c0_i32_0 = arith.constant 0 : i32
    %c0_i32_1 = arith.constant 0 : i32
    return %c0_i32, %c0_i32_0 : i32, i32
  }
  func.func @transform_2(%arg0: i32) -> (i32, i32) {
    %c0_i32 = arith.constant 0 : i32
    %c0_i32_0 = arith.constant 0 : i32
    %c0_i32_1 = arith.constant 0 : i32
    return %c0_i32, %c0_i32_0 : i32, i32
  }
  func.func @transform_3(%arg0: i32) -> (i32, i32) {
    %c0_i32 = arith.constant 0 : i32
    %c0_i32_0 = arith.constant 0 : i32
    return %arg0, %c0_i32 : i32, i32
  }
}

</mosaic_0001>

<bundles_post_ra>
// kernel: tpu_custom_call.1
= control target key start
LH: loop header
LB: loop body
LE: loop exit
PB: predicated region body
PF: predicated region fallthrough
CT: control target
= control target key end

     0   :  { %6 = vsyncpa [#allocation3], 0  ;;  %s304_s0 = inlined_call_operand.hbm [shape: f32[8,128], index: 0, kind: input, shape index: {}]   ;;  %s305_s1 = inlined_call_operand.hbm [shape: f32[8,128], index: 1, kind: output, shape index: {}]  }
   0x1   :  { %7 = vsyncpa [#allocation4], 0  ;;  %s257_s6 = smov 0  }
   0x2 LB: > { %s144_s7 = sadd.s32 4294967295, %s243_s6   ;;  %p145_p0 = scmp.ge.s32.totalorder %s243_s6, 1  ;;  %s243_s6 = sphi %s257_s6, %s13_s6  }
   0x3   : > { %p60_p1 = scmp.lt.s32.totalorder %s243_s6, 3  ;;  %p269_p3 = scmp.eq.s32.totalorder %s144_s7, 0 }
   0x4   : > { %s245_s10 = smov [#allocation2]  }
   0x5   : > { %p265_p2 = pnand %p145_p0, %p60_p1  ;;  %s73_s11 = sshll.u32 %s245_s10, 4  ;;  %s74_s11 = int_to_ptr.vmem [resolvable:$true] %s73_s11 }
   0x6   : > { %s190_s12 = scalar_lea.vmem %s74_s11, 128  ;;  %p198_p10 = scmp.lt.s32.totalorder %s74_s11, %s74_s11 }
   0x7   : > { %p161_p4 = pneg %p265_p2  ;;  %p191_p7 = scmp.ne.s32.totalorder %s74_s11, %s190_s12 }
   0x8   : > { %p199_p11 = scmp.lt.s32.totalorder %s190_s12, %s190_s12 }
   0x9   : > { %p162_p5 = pnand %p269_p3, %p161_p4 }
   0xa   : > { %p200_p12 = por %p199_p11, %p198_p10 }
   0xb   : > { %p181_p6 = pneg %p162_p5 }
   0xd   : > { %p193_p8 = pnand %p191_p7, %p181_p6 }
   0xf   : > { %p194_p9 = pneg %p193_p8 }
  0x11   : > { %p201_p13 = pnand %p200_p12, %p194_p9 }
  0x13   : > { %204 = shalt.err (!%p201_p13)
}
  0x14   : > { %164 = dma.hbm_to_vmem [thread:$0]  (!%p162_p5), %s304_s0, 128, %s74_s11, [#allocation3]  }
  0x15   : > { %86 = sbr.rel (%p265_p2) target bundleno = 42 (0x2a), region = 24 }
  0x1a   : > { %234 = dma.done.wait (%p269_p3), [#allocation3], 128  }
  0x1b   : > { %236 = vsyncadd (%p269_p3), [#allocation3], 4294967168  ;;  %s246_s15 = smov [#allocation5]   ;;  %p286_p0 = scmp.eq.s32.totalorder %s144_s7, 1  ;;  %v96_v0 = vld [vmem:[#allocation2] sm:$0xff] }
  0x1c   : > { %s105_s16 = sshll.u32 %s246_s15, 4  ;;  %97 = vst [vmem:[#allocation5] sm:$0xff] %v96_v0  ;;  %s106_s16 = int_to_ptr.vmem [resolvable:$true] %s105_s16 }
  0x1d   : > { %s205_s18 = scalar_lea.vmem %s106_s16, 128  ;;  %p212_p5 = scmp.lt.s32.totalorder %s106_s16, %s106_s16 }
  0x1e   : > { %p206_p1 = scmp.ne.s32.totalorder %s106_s16, %s205_s18  ;;  %p213_p6 = scmp.lt.s32.totalorder %s205_s18, %s205_s18 }
  0x20   : > { %p207_p2 = pnand %p206_p1, %p286_p0  ;;  %p214_p7 = por %p213_p6, %p212_p5 }
  0x22   : > { %p208_p4 = pneg %p207_p2 }
  0x24   : > { %p215_p8 = pnand %p214_p7, %p208_p4 }
  0x26   : > { %218 = shalt.err (!%p215_p8)
}
  0x27   : > { %158 = dma.vmem_to_hbm [thread:$0]  (%p286_p0), %s106_s16, 128, %s305_s1, [#allocation4]  }
  0x28   : > { %238 = dma.done.wait (%p286_p0), [#allocation4], 128  }
  0x29   : > { %240 = vsyncadd (%p286_p0), [#allocation4], 4294967168 }
  0x2a PF: > { %s13_s6 = sadd.s32 1, %s243_s6  }
  0x2b   : > { %p10_p3 = scmp.ge.s32.totalorder %s13_s6, 4  }
  0x2d   :  { %12 = sbr.rel (!%p10_p3) target bundleno = 2 (0x2), region = 53 }
  0x32   :  { %118 = vsyncpa [#allocation3], 1 }
  0x33   :  { %120 = vsyncpa [#allocation3 + $0x1], 1 }
  0x34   :  { %121 = vsyncpa [#allocation4], 1 }
  0x35   :  { %123 = vsyncpa [#allocation4 + $0x1], 1 }

// kernel: tpu_custom_call.1
= control target key start
LH: loop header
LB: loop body
LE: loop exit
PB: predicated region body
PF: predicated region fallthrough
CT: control target
= control target key end

     0   :  { %8 = vsyncpa [#allocation3], 0  ;;  %s781_s0 = inlined_call_operand.hbm [shape: f32[16,32], index: 0, kind: input, shape index: {}]   ;;  %s782_s1 = inlined_call_operand.hbm [shape: bf16[32,64], index: 1, kind: input, shape index: {}]   ;;  %s783_s2 = inlined_call_operand.vmem [shape: f32[1,64], index: 2, kind: input, shape index: {}]   ;;  %s784_s3 = inlined_call_operand.hbm [shape: bf16[16,64], index: 3, kind: output, shape index: {}]  }
   0x1   :  { %10 = vsyncpa [#allocation3 + $0x1], 0 }
   0x2   :  { %11 = vsyncpa [#allocation6], 0 }
   0x3   :  { %12 = vsyncpa [#allocation4], 0 }
   0x4   :  { %14 = vsyncpa [#allocation4 + $0x1], 0  ;;  %s611_s12 = smov 0   ;;  %s613_s13 = smov 0  }
   0x5   :  { %s615_s14 = smov 0   ;;  %s617_s15 = smov 0  }
   0x6 LB: > { %s632_s16 = sadd.s32 4294967295, %s582_s15   ;;  %s368_s17 = sadd.s32 4294967294, %s582_s15   ;;  %s582_s15 = sphi %s617_s15, %s806_s15   ;;  %s578_s14 = sphi %s615_s14, %s805_s14   ;;  %s574_s13 = sphi %s613_s13, %s804_s13   ;;  %s570_s12 = sphi %s611_s12, %s803_s12  }
   0x7   : > { %p40_p0 = scmp.ne.s32.totalorder %s574_s13, %s570_s12  ;;  %p785_p1 = scmp.eq.s32.totalorder %s632_s16, 0 }
   0x8   : > { %p112_p3 = scmp.eq.s32.totalorder %s368_s17, 1  ;;  %p369_p5 = scmp.ge.s32.totalorder %s582_s15, 1 }
   0x9   : > { %p641_p4 = por %p785_p1, %p40_p0  ;;  %p119_p7 = scmp.lt.s32.totalorder %s582_s15, 3 }
   0xa   : > { %p646_p6 = por %p112_p3, %p40_p0  ;;  %s584_s21 = smov [#allocation5]  }
   0xb   : > { %s789_s18 = scalar_select %p641_p4, 1, 0 }
   0xc   : > { %s790_s19 = scalar_select %p646_p6, 1, 0 }
   0xd   : > { %p651_p8 = pnand %p369_p5, %p119_p7  ;;  %s131_s22 = sshll.u32 %s584_s21, 4  ;;  %s132_s22 = int_to_ptr.vmem [resolvable:$true] %s131_s22 }
   0xe   : > { %s665_s24 = sadd.s32 1, %s582_s15   ;;  %s27_s25 = sadd.s32 1, %s578_s14 }
   0xf   : > { %s791_s20 = scalar_select %p651_p8, 1, 0 }
  0x10   : > { %p405_p9 = pneg %p651_p8  ;;  %s24_s26 = ssub.s32 %s582_s15, %s665_s24 }
  0x11   : > { %s471_s27 = scalar_lea.vmem %s132_s22, 256  ;;  %p479_p5 = scmp.lt.s32.totalorder %s132_s22, %s132_s22 }
  0x12   : > { %p660_p11 = pnand %p405_p9, %p785_p1  ;;  %p472_p13 = scmp.ne.s32.totalorder %s132_s22, %s471_s27 }
  0x13   : > { %p480_p7 = scmp.lt.s32.totalorder %s471_s27, %s471_s27 }
  0x14   : > { %p462_p12 = pneg %p660_p11 }
  0x15   : > { %p481_p10 = por %p480_p7, %p479_p5 }
  0x16   : > { %p474_p0 = pnand %p472_p13, %p462_p12 }
  0x18   : > { %p475_p3 = pneg %p474_p0 }
  0x1a   : > { %p482_p2 = pnand %p481_p10, %p475_p3 }
  0x1c   : > { %485 = shalt.err (!%p482_p2)
}
  0x1d   : > { %s585_s28 = smov 64   ;;  %s586_s29 = smov 4  }
  0x1e   : > { %408 = dma.hbm_to_vmem [thread:$0]  (!%p660_p11), %s782_s1, 256, %s132_s22, [#allocation6], %s585_s28, %s585_s28, %s586_s29  }
  0x1f   : > { %p25_p9 = scmp.eq.s32.totalorder %s24_s26, 0  ;;  %p34_p12 = scmp.ne.s32.totalorder %s578_s14, %s574_s13 }
  0x20   : > { %p35_p10 = scmp.eq.s32.totalorder %s582_s15, 0  ;;  %p418_p2 = scmp.lt.s32.totalorder %s582_s15, 2 }
  0x21   : > { %s682_s5 = scalar_select %p25_p9, %s578_s14, %s27_s25  }
  0x22   : > { %p36_p13 = por %p35_p10, %p34_p12  ;;  %p793_p0 = scmp.eq.s32.totalorder %s632_s16, 1 }
  0x23   : > { %s148_s7 = sand.u32 1, %s578_s14   ;;  %s373_s8 = sshll.u32 %s582_s15, 7 }
  0x24   : > { %p686_p3 = por %p793_p0, %p34_p12  ;;  %s372_s9 = sshll.u32 %s148_s7, 3 }
  0x25   : > { %s695_s17 = scalar_lea.hbm %s781_s0, %s373_s8  ;;  %s152_s21 = scalar_lea.vmem [#allocation2], %s372_s9 }
  0x26   : > { %s794_s6 = scalar_select %p686_p3, 1, 0 }
  0x27   : > { %s159_s22 = sshll.u32 %s152_s21, 4  ;;  %p697_p11 = pnand %p418_p2, %p36_p13  ;;  %s160_s22 = int_to_ptr.vmem [resolvable:$true] %s159_s22 }
  0x28   : > { %s149_s25 = scalar_lea.sflag [#allocation3], %s148_s7  ;;  %s486_s26 = scalar_lea.hbm %s695_s17, 128 }
  0x29   : > { %p487_p5 = scmp.ne.s32.totalorder %s695_s17, %s486_s26  ;;  %p488_p7 = pneg %p697_p11 }
  0x2a   : > { %s491_s29 = scalar_lea.hbm %s781_s0, 256  ;;  %p492_p10 = scmp.lt.s32.totalorder %s695_s17, %s781_s0 }
  0x2b   : > { %p489_p9 = pnand %p488_p7, %p487_p5  ;;  %p493_p2 = scmp.lt.s32.totalorder %s491_s29, %s486_s26 }
  0x2d   : > { %p490_p12 = pneg %p489_p9  ;;  %p494_p13 = por %p493_p2, %p492_p10 }
  0x2f   : > { %p495_p0 = pnand %p494_p13, %p490_p12 }
  0x31   : > { %498 = shalt.err (!%p495_p0)
}
  0x32   : > { %s499_s8 = scalar_lea.vmem %s160_s22, 128  ;;  %s587_s7 = smov [#allocation2]  }
  0x33   : > { %p500_p1 = scmp.ne.s32.totalorder %s160_s22, %s499_s8  ;;  %s504_s9 = sshll.u32 %s587_s7, 4  ;;  %s505_s9 = int_to_ptr.vmem [resolvable:$false] %s504_s9 }
  0x34   : > { %s506_s10 = scalar_lea.vmem %s505_s9, 256  ;;  %p507_p5 = scmp.lt.s32.totalorder %s160_s22, %s505_s9 }
  0x35   : > { %p502_p6 = pnand %p500_p1, %p488_p7  ;;  %p508_p9 = scmp.lt.s32.totalorder %s506_s10, %s499_s8 }
  0x37   : > { %p503_p3 = pneg %p502_p6  ;;  %p509_p4 = por %p508_p9, %p507_p5 }
  0x39   : > { %p510_p8 = pnand %p509_p4, %p503_p3 }
  0x3b   : > { %513 = shalt.err (!%p510_p8)
}
  0x3c   : > { %412 = dma.hbm_to_vmem [thread:$0]  (!%p697_p11), %s695_s17, 128, %s160_s22, %s149_s25  }
  0x3d   : > { %p796_p12 = scmp.ne.s32.totalorder %s791_s20, 0 }
  0x3e   : > { %s718_s11 = sand.u32 (!%p796_p12), 1, %s574_s13   ;;  %p797_p1 = scmp.ne.s32.totalorder (!%p796_p12), %s789_s18, 0 }
  0x3f   : > { %168 = sbr.rel (%p796_p12) target bundleno = 292 (0x124), region = 32  ;;  %s375_s21 = sshll.u32 (!%p796_p12), %s718_s11, 3 }
  0x40   : > { %s171_s26 = scalar_lea.sflag (!%p796_p12), [#allocation3], %s718_s11  ;;  %s174_s27 = scalar_lea.vmem (!%p796_p12), [#allocation2], %s375_s21 }
  0x44   : > { %557 = dma.done.wait (%p797_p1), %s171_s26, 128  }
  0x45   : > { %559 = vsyncadd (%p797_p1), %s171_s26, 4294967168  ;;  %p798_p4 = scmp.eq.s32.totalorder %s632_s16, 0 }
  0x47   : > { %561 = dma.done.wait (%p798_p4), [#allocation6], 256   ;;  %p799_p6 = pmov %p798_p4 }
  0x48   : > { %v588_v0 = vmov 0.0   ;;  %vm589_vm0 = vmmov 0   ;;  %v458_v1 = vld [vmem:[#allocation5 + $0x8] sm:$0xff]   ;;  %v459_v2 = vld [vmem:[#allocation5] sm:$0xff]   ;;  %v202_v3 = vld [vmem:[%s174_s27] sm:$0xff]  ;;  %vm227_vm1 = vcmask 261120  }
  0x49   : > { %563 = vsyncadd (%p799_p6), [#allocation6], 4294967040  ;;  %389 = vmatprep.subr.bf16.mxu0 %v588_v0  ;;  %393 = vmatprep.mubr.msk.bf16.mxu0 %vm589_vm0, %v588_v0  ;;  %v203_v4 = vpack.c.bf16 %v202_v3, %v202_v3  ;;  %s377_s18 = sshll.u32 %s718_s11, 2  ;;  %v378_v5 = vld [vmem:[%s783_s2] ss:$0 sm:$0xff]  ;;  %s383_s22 = sshll.u32 %s632_s16, 6 }
  0x4a   : > { %390 = vmatpush3.bf16.msra.mxu0 %v458_v1  ;;  %s200_s23 = scalar_lea.vmem [#allocation7], %s377_s18  ;;  %vm272_vm2 = vcmask 519168   ;;  %s738_s30 = scalar_lea.hbm %s784_s3, %s383_s22 }
  0x4b   : > { %391 = vmatprep.subr.bf16.mxu0 %v588_v0  ;;  %s288_s25 = sshll.u32 %s200_s23, 4  ;;  %s275_s16 = scalar_lea.sflag [#allocation4], %s718_s11  ;;  %s740_s25 = int_to_ptr.vmem [resolvable:$true] %s288_s25 }
  0x4c   : > { %s514_s4 = scalar_lea.vmem %s740_s25, 64  ;;  %p800_p3 = scmp.ne.s32.totalorder %s794_s6, 0 }
  0x4d   : > { %p515_p8 = scmp.ne.s32.totalorder %s740_s25, %s514_s4  ;;  %s590_s8 = smov [#allocation7]  }
  0x4e   : > { %392 = vmatpush3.bf16.msra.mxu0 %v459_v2  ;;  %s518_s7 = sshll.u32 %s590_s8, 4  ;;  %s519_s7 = int_to_ptr.vmem [resolvable:$false] %s518_s7 }
  0x4f   : > { %p516_p11 = pnand %p515_p8, %p800_p3  ;;  %s520_s9 = scalar_lea.vmem %s519_s7, 128 }
  0x50   : > { %p521_p10 = scmp.lt.s32.totalorder %s740_s25, %s519_s7  ;;  %p522_p2 = scmp.lt.s32.totalorder %s520_s9, %s514_s4 }
  0x51   : > { %394 = vmatmul.mubr.msk.bf16.vlgmr.msra.gmra.mxu0 %vm227_vm1, %v203_v4  ;;  %p517_p7 = pneg %p516_p11 }
  0x52   : > { %p523_p13 = por %p522_p2, %p521_p10 }
  0x54   : > { %p524_p0 = pnand %p523_p13, %p517_p7 }
 0x111   : > { %v265_v6 = vpop.f32.mrf.mxu0 }
 0x112   : > { %v266_v7 = vadd.f32 %v378_v5, %v265_v6 }
 0x113   : > { %v395_v8 = vpop.f32.mrf.mxu0 }
 0x114   : > { %v271_v9 = vpack.c.bf16 %v266_v7, %v266_v7 }
 0x115   : > { %v268_v10 = vpop.f32.mrf.mxu0 }
 0x116   : > { %273 = vst.msk [vmem:[%s200_s23] sm:$0xf] %vm272_vm2, %v271_v9 }
 0x117   : > { %v396_v11 = vpop.f32.mrf.mxu0 }
 0x118   : > { %527 = shalt.err (!%p524_p0)
}
 0x119   : > { %s528_s10 = scalar_lea.hbm %s738_s30, 64  ;;  %s532_s26 = scalar_lea.hbm %s784_s3, 128 }
 0x11a   : > { %p529_p5 = scmp.ne.s32.totalorder %s738_s30, %s528_s10  ;;  %p533_p1 = scmp.lt.s32.totalorder %s738_s30, %s784_s3 }
 0x11b   : > { %p534_p4 = scmp.lt.s32.totalorder %s532_s26, %s528_s10 }
 0x11c   : > { %p530_p9 = pnand %p529_p5, %p800_p3 }
 0x11d   : > { %p535_p6 = por %p534_p4, %p533_p1 }
 0x11e   : > { %p531_p12 = pneg %p530_p9 }
 0x120   : > { %p536_p8 = pnand %p535_p6, %p531_p12 }
 0x122   : > { %539 = shalt.err (!%p536_p8)
}
 0x123   : > { %403 = dma.vmem_to_hbm [thread:$0]  (%p800_p3), %s740_s25, 64, %s738_s30, %s275_s16  }
 0x124 PF: > { %s300_s20 = sand.u32 1, %s570_s12   ;;  %p801_p11 = scmp.ne.s32.totalorder %s790_s19, 0 }
 0x125   : > { %p802_p7 = scmp.ge.s32.totalorder %s582_s15, 2  ;;  %s301_s17 = scalar_lea.sflag [#allocation4], %s300_s20 }
 0x127   : > { %p414_p10 = pnand %p802_p7, %p801_p11 }
 0x129   : > { %p415_p2 = pneg %p414_p10 }
 0x12b   : > { %565 = dma.done.wait (%p415_p2), %s301_s17, 64  }
 0x12c   : > { %567 = vsyncadd (%p415_p2), %s301_s17, 4294967232  ;;  %p17_p13 = scmp.ge.s32.totalorder %s665_s24, 4   ;;  %s803_s12 = smov %s574_s13 }
 0x12d   : > { %s804_s13 = smov %s578_s14  ;;  %s805_s14 = smov %s682_s5 }
 0x12e   : > { %s806_s15 = smov %s665_s24  ;;  %19 = sbr.rel (!%p17_p13) target bundleno = 6 (0x6), region = 81 }
 0x133   :  { %306 = vsyncpa [#allocation3], 1 }
 0x134   :  { %308 = vsyncpa [#allocation3 + $0x1], 1 }
 0x135   :  { %309 = vsyncpa [#allocation6], 1 }
 0x136   :  { %310 = vsyncpa [#allocation4], 1 }
 0x137   :  { %312 = vsyncpa [#allocation4 + $0x1], 1 }

</bundles_post_ra>
